<compile_context>
chip_gen: v6e
topology: v6e:2x2x1
jax: 0.10.0
libtpu: 0.0.40
codegen_flags: <defaults>
</compile_context>

<pallas_src>
import jax
import jax.numpy as jnp
from jax.experimental import pallas as pl
from jax.experimental.pallas import tpu as pltpu

LANE = 128
SUBLANE = 8


def _round_up(x, m):
    return ((x + m - 1) // m) * m


# --------------------------------------------------------------------------
# Kernel: fused (concat -> Linear) as two partial matmuls + bias.
# --------------------------------------------------------------------------
def _fused_linear_kernel(wcat_ref, xenc_ref, ww_ref, wx_ref, b_ref, out_ref):
    # f32 MXU accumulation, f32 bias add, one cast on the final store.
    acc = jnp.dot(wcat_ref[...], ww_ref[...], preferred_element_type=jnp.float32)
    acc = acc + jnp.dot(xenc_ref[...], wx_ref[...], preferred_element_type=jnp.float32)
    acc = acc + b_ref[...].astype(jnp.float32)
    out_ref[...] = acc.astype(out_ref.dtype)


def _fused_linear(wcat, xenc, ww, wx, bias, *, tile_b,
                  vmem_limit_bytes=40 * 1024 * 1024):
    """out[b, :] = wcat[b] @ ww + xenc[b] @ wx + bias.

    wcat: (B, kw)   small symbolic chunk (kw = 22, un-padded)
    xenc: (B, ke)   big encoding chunk (streamed once from HBM)
    ww:   (kw, n)   lane-padded output dim (n multiple of 128)
    wx:   (ke, n)
    bias: (1, n)
    """
    B, kw = wcat.shape
    Be, ke = xenc.shape
    assert Be == B
    n = ww.shape[1]
    assert ww.shape == (kw, n) and wx.shape == (ke, n) and bias.shape == (1, n)
    assert tile_b % SUBLANE == 0 and n % LANE == 0

    grid = (pl.cdiv(B, tile_b),)   # ragged last block handled by Pallas

    itemsize = jnp.dtype(xenc.dtype).itemsize
    cost = pl.CostEstimate(
        flops=2 * B * (kw + ke) * n,
        transcendentals=0,
        bytes_accessed=(B * (kw + ke) + B * n + (kw + ke) * n + n) * itemsize,
    )

    # NOTE: if xprof shows exposed DMA gaps between grid steps (most likely on
    # v7x), sweep pipeline_mode=pl.Buffered(3) on the xenc / out BlockSpecs.
    return pl.pallas_call(
        _fused_linear_kernel,
        out_shape=jax.ShapeDtypeStruct((B, n), xenc.dtype),
        grid_spec=pltpu.PrefetchScalarGridSpec(
            num_scalar_prefetch=0,
            grid=grid,
            in_specs=[
                pl.BlockSpec((tile_b, kw), lambda i: (i, 0)),  # tiny symbolic chunk
                pl.BlockSpec((tile_b, ke), lambda i: (i, 0)),  # big encoding chunk
                pl.BlockSpec((kw, n), lambda i: (0, 0)),       # weight (VMEM-resident)
                pl.BlockSpec((ke, n), lambda i: (0, 0)),       # weight (VMEM-resident)
                pl.BlockSpec((1, n), lambda i: (0, 0)),        # bias   (VMEM-resident)
            ],
            out_specs=pl.BlockSpec((tile_b, n), lambda i: (i, 0)),
        ),
        compiler_params=pltpu.CompilerParams(
            dimension_semantics=("parallel",),   # shard batch over TCs on v7x
            vmem_limit_bytes=vmem_limit_bytes,   # v5e scoped default (16 MiB) is low
        ),
        cost_estimate=cost,
    )(wcat, xenc, ww, wx, bias)


# --------------------------------------------------------------------------
# Module wrapper (mirrors the PyTorch forward semantics).
# --------------------------------------------------------------------------
class MNISTNeSyDiffClassifier:
    def __init__(self, key, n_images=2, embed_all_images=False,
                 hidden_channels=32, c_dim=10, latent_dim=16, dropout=0.5,
                 dtype=jnp.float32):
        assert n_images == 2, "Only 2 images are supported for now"
        self.hidden_channels = hidden_channels
        self.c_dim = c_dim
        self.latent_dim = latent_dim
        self.n_images = n_images
        self.unflatten_dim = (3, 7)
        self.embed_all_images = embed_all_images
        self.dtype = dtype

        self.in_features = int(
            4 * hidden_channels * self.unflatten_dim[0] * self.unflatten_dim[1]
            * (3 / 7) * (n_images if embed_all_images else 1)
            + n_images * (c_dim + 1)
        )
        self.k_w = n_images * (c_dim + 1)            # the two w_0 slices (22)
        self.k_enc = self.in_features - self.k_w     # encoding features (1152/2304)

        # PyTorch Linear-style init: U(-1/sqrt(in), 1/sqrt(in)).
        kw_key, kb_key = jax.random.split(key)
        bound = 1.0 / (self.in_features ** 0.5)
        # Stored as [in_features, c_dim] (transposed vs. torch's [out, in]).
        self.weight = jax.random.uniform(
            kw_key, (self.in_features, c_dim), minval=-bound, maxval=bound,
            dtype=jnp.float32).astype(dtype)
        self.bias = jax.random.uniform(
            kb_key, (c_dim,), minval=-bound, maxval=bound,
            dtype=jnp.float32).astype(dtype)

        # ---- kernel-ready parameter layouts (built once) -------------------
        self.n_pad = _round_up(c_dim, LANE)           # lane-dense logits (128)

        w_w = self.weight[: self.k_w]                 # rows for (slot0, slot1) of wcat
        w_x = self.weight[self.k_w:]                  # rows for the encodings

        def pad_cols(a, cols):
            return jnp.pad(a, ((0, 0), (0, cols - a.shape[1])))

        self.ww = pad_cols(w_w, self.n_pad)           # (22, 128)
        self.wx = pad_cols(w_x, self.n_pad)           # (k_enc, 128)
        self.b = jnp.pad(self.bias, (0, self.n_pad - c_dim)).reshape(1, self.n_pad)

        # "Swapped" symbolic weight: with wcat always laid out as concat(w1, w2),
        # using these weight rows is equivalent to feeding concat(w2, w1).
        half_w = c_dim + 1                            # 11
        ww_swap = jnp.concatenate([w_w[half_w:], w_w[:half_w]], axis=0)
        self.ww_swap = pad_cols(ww_swap, self.n_pad)

        if embed_all_images:
            # c2 uses cat(w2, w1, enc_1, enc_0).  Instead of re-concatenating the
            # big encoding tensor, swap the weight row-blocks; instead of a second
            # pallas_call, concatenate the c1/c2 weights along N so the encoding
            # stream is read from HBM exactly once (single kernel, N = 256).
            half_e = self.k_enc // n_images
            wx_swap = jnp.concatenate([w_x[half_e:], w_x[:half_e]], axis=0)
            self.ww_fused = jnp.concatenate([self.ww, self.ww_swap], axis=1)
            self.wx_fused = jnp.concatenate([self.wx, pad_cols(wx_swap, self.n_pad)],
                                            axis=1)
            self.b_fused = jnp.concatenate([self.b, self.b], axis=1)

    def _tile_b(self, B):
        # Aim for >= 2 grid steps so v7x's two TensorCores both get work; grow
        # tiles only for large B (amortizes per-step overhead on v5e/v6e).
        if B >= 4096:
            return 1024
        return min(512, max(SUBLANE, _round_up(pl.cdiv(B, 2), SUBLANE)))

    def __call__(self, x_encodings, w_0_BWD, image_to_classify=-1):
        # Flatten arbitrary leading batch dims (torch `...` indexing semantics).
        lead = x_encodings.shape[:-1]
        enc = x_encodings.reshape((-1, x_encodings.shape[-1]))
        w0 = w_0_BWD.reshape((-1,) + w_0_BWD.shape[-2:])
        assert enc.shape[-1] == self.k_enc
        assert w0.shape[-2:] == (self.n_images, self.c_dim + 1)
        B = enc.shape[0]
        assert w0.shape[0] == B

        # Tiny (B, 22) symbolic chunk; the big encoding tensor is never
        # concatenated, padded, or otherwise copied wrapper-side.
        wcat = jnp.concatenate([w0[:, 0, :], w0[:, 1, :]], axis=-1).astype(enc.dtype)

        tile_b = self._tile_b(B)

        if self.embed_all_images:
            out = _fused_linear(wcat, enc, self.ww_fused, self.wx_fused,
                                self.b_fused, tile_b=tile_b)   # (B, 256)
            c1 = out[:, : self.c_dim]
            c2 = out[:, self.n_pad: self.n_pad + self.c_dim]
            res = jnp.stack([c1, c2], axis=-2)
            return res.reshape(lead + (self.n_images, self.c_dim))

        if image_to_classify == 0:
            ww = self.ww
        elif image_to_classify == 1:
            ww = self.ww_swap            # == feeding cat(w2, w1, enc)
        else:
            raise ValueError(f"Invalid image to classify: {image_to_classify}")

        out = _fused_linear(wcat, enc, ww, self.wx, self.b, tile_b=tile_b)
        return out[:, : self.c_dim].reshape(lead + (self.c_dim,))


# --------------------------------------------------------------------------
# Pure-JAX reference (mirrors the PyTorch forward exactly), for verification.
# --------------------------------------------------------------------------
def _reference_forward(model, x_encodings, w_0_BWD, image_to_classify=-1):
    w1 = w_0_BWD[..., 0, :]
    w2 = w_0_BWD[..., 1, :]
    W = model.weight.astype(jnp.float32)
    b = model.bias.astype(jnp.float32)
    dense = lambda x: x.astype(jnp.float32) @ W + b
    if model.embed_all_images:
        c1 = dense(jnp.concatenate([w1, w2, x_encodings], axis=-1))
        half = x_encodings.shape[-1] // model.n_images
        e1, e2 = x_encodings[..., :half], x_encodings[..., half:]
        c2 = dense(jnp.concatenate([w2, w1, e2, e1], axis=-1))
        return jnp.stack([c1, c2], axis=-2)
    if image_to_classify == 0:
        return dense(jnp.concatenate([w1, w2, x_encodings], axis=-1))
    if image_to_classify == 1:
        return dense(jnp.concatenate([w2, w1, x_encodings], axis=-1))
    raise ValueError(f"Invalid image to classify: {image_to_classify}")


if __name__ == "__main__":
    key = jax.random.PRNGKey(0)
    k_model, k_model_all, k_enc, k_w0, k_enc2, k_w02 = jax.random.split(key, 6)

    c_dim = 10

    # ---- default config: embed_all_images=False, small batch --------------
    B = 2
    model = MNISTNeSyDiffClassifier(k_model)              # in_features = 1174
    x_enc = jax.random.normal(k_enc, (B, model.k_enc), dtype=jnp.float32)
    w0 = jax.random.normal(k_w0, (B, 2, c_dim + 1), dtype=jnp.float32)

    out0 = jax.block_until_ready(model(x_enc, w0, image_to_classify=0))
    out1 = jax.block_until_ready(model(x_enc, w0, image_to_classify=1))
    ref0 = _reference_forward(model, x_enc, w0, image_to_classify=0)
    ref1 = _reference_forward(model, x_enc, w0, image_to_classify=1)
    assert out0.shape == (B, c_dim) and out1.shape == (B, c_dim)
    assert jnp.allclose(out0, ref0, atol=1e-4, rtol=1e-4)
    assert jnp.allclose(out1, ref1, atol=1e-4, rtol=1e-4)

    # ---- embed_all_images=True (single fused kernel, N = 256) --------------
    model_all = MNISTNeSyDiffClassifier(k_model_all, embed_all_images=True)
    x_enc_all = jax.random.normal(k_enc, (B, model_all.k_enc), dtype=jnp.float32)
    out_all = jax.block_until_ready(model_all(x_enc_all, w0))
    ref_all = _reference_forward(model_all, x_enc_all, w0)
    assert out_all.shape == (B, 2, c_dim)
    assert jnp.allclose(out_all, ref_all, atol=1e-4, rtol=1e-4)

    # ---- ragged batch (not a multiple of 8 / tile_b): exercises cdiv grid --
    B2 = 13
    x_enc2 = jax.random.normal(k_enc2, (B2, model.k_enc), dtype=jnp.float32)
    w02 = jax.random.normal(k_w02, (B2, 2, c_dim + 1), dtype=jnp.float32)
    out2 = jax.block_until_ready(model(x_enc2, w02, image_to_classify=0))
    ref2 = _reference_forward(model, x_enc2, w02, image_to_classify=0)
    assert out2.shape == (B2, c_dim)
    assert jnp.allclose(out2, ref2, atol=1e-4, rtol=1e-4)

    print("KERNEL_OK")
</pallas_src>

<mosaic_0001>
module attributes {stable_mosaic.version = 11 : i64} {
  func.func @_fused_linear_kernel(%arg0: i32, %arg1: memref<8x22xf32, #tpu.memory_space<vmem>>, %arg2: memref<8x1152xf32, #tpu.memory_space<vmem>>, %arg3: memref<22x128xf32, #tpu.memory_space<vmem>>, %arg4: memref<1152x128xf32, #tpu.memory_space<vmem>>, %arg5: memref<1x128xf32, #tpu.memory_space<vmem>>, %arg6: memref<8x128xf32, #tpu.memory_space<vmem>>) attributes {dimension_semantics = [#tpu.dimension_semantics<parallel>], iteration_bounds = array<i64: 1>, scalar_prefetch = 0 : i64, scratch_operands = 0 : i64, tpu.core_type = #tpu.core_type<tc>, window_params = [{transform_indices = @transform_0, window_bounds = array<i64: 8, 22>}, {transform_indices = @transform_1, window_bounds = array<i64: 8, 1152>}, {pipeline_mode = #tpu.pipeline_mode<synchronous>, transform_indices = @transform_2, window_bounds = array<i64: 22, 128>}, {pipeline_mode = #tpu.pipeline_mode<synchronous>, transform_indices = @transform_3, window_bounds = array<i64: 1152, 128>}, {pipeline_mode = #tpu.pipeline_mode<synchronous>, transform_indices = @transform_4, window_bounds = array<i64: 1, 128>}, {transform_indices = @transform_5, window_bounds = array<i64: 8, 128>}]} {
    %c0 = arith.constant 0 : index
    %c0_0 = arith.constant 0 : index
    %0 = vector.load %arg1[%c0, %c0_0] : memref<8x22xf32, #tpu.memory_space<vmem>>, vector<8x22xf32>
    %c0_1 = arith.constant 0 : index
    %c0_2 = arith.constant 0 : index
    %1 = vector.load %arg3[%c0_1, %c0_2] : memref<22x128xf32, #tpu.memory_space<vmem>>, vector<22x128xf32>
    %cst = arith.constant dense<0.000000e+00> : vector<8x128xf32>
    %2 = tpu.matmul %0, %1, %cst {dimension_numbers = #tpu.dot_dimension_numbers<[1], [0], [0], [1], [0, 0, 1, 1], [], []>} : vector<8x22xf32>, vector<22x128xf32>, vector<8x128xf32> -> vector<8x128xf32>
    %c0_3 = arith.constant 0 : index
    %c0_4 = arith.constant 0 : index
    %3 = vector.load %arg2[%c0_3, %c0_4] : memref<8x1152xf32, #tpu.memory_space<vmem>>, vector<8x1152xf32>
    %c0_5 = arith.constant 0 : index
    %c0_6 = arith.constant 0 : index
    %4 = vector.load %arg4[%c0_5, %c0_6] : memref<1152x128xf32, #tpu.memory_space<vmem>>, vector<1152x128xf32>
    %cst_7 = arith.constant dense<0.000000e+00> : vector<8x128xf32>
    %5 = tpu.matmul %3, %4, %cst_7 {dimension_numbers = #tpu.dot_dimension_numbers<[1], [0], [0], [1], [0, 0, 1, 1], [], []>} : vector<8x1152xf32>, vector<1152x128xf32>, vector<8x128xf32> -> vector<8x128xf32>
    %6 = arith.addf %2, %5 : vector<8x128xf32>
    %c0_8 = arith.constant 0 : index
    %c0_9 = arith.constant 0 : index
    %7 = vector.load %arg5[%c0_8, %c0_9] : memref<1x128xf32, #tpu.memory_space<vmem>>, vector<1x128xf32>
    %8 = vector.broadcast %7 : vector<1x128xf32> to vector<8x128xf32>
    %9 = arith.addf %6, %8 : vector<8x128xf32>
    %c0_10 = arith.constant 0 : index
    %c0_11 = arith.constant 0 : index
    %10 = vector.load %arg6[%c0_10, %c0_11] : memref<8x128xf32, #tpu.memory_space<vmem>>, vector<8x128xf32>
    tpu.vector_store %arg6[%c0_10, %c0_11], %9 {strides = array<i32>} : memref<8x128xf32, #tpu.memory_space<vmem>>, vector<8x128xf32>,
    return
  }
  func.func @transform_0(%arg0: i32) -> (i32, i32) {
    %c0_i32 = arith.constant 0 : i32
    %c0_i32_0 = arith.constant 0 : i32
    return %arg0, %c0_i32 : i32, i32
  }
  func.func @transform_1(%arg0: i32) -> (i32, i32) {
    %c0_i32 = arith.constant 0 : i32
    %c0_i32_0 = arith.constant 0 : i32
    return %arg0, %c0_i32 : i32, i32
  }
  func.func @transform_2(%arg0: i32) -> (i32, i32) {
    %c0_i32 = arith.constant 0 : i32
    %c0_i32_0 = arith.constant 0 : i32
    %c0_i32_1 = arith.constant 0 : i32
    return %c0_i32, %c0_i32_0 : i32, i32
  }
  func.func @transform_3(%arg0: i32) -> (i32, i32) {
    %c0_i32 = arith.constant 0 : i32
    %c0_i32_0 = arith.constant 0 : i32
    %c0_i32_1 = arith.constant 0 : i32
    return %c0_i32, %c0_i32_0 : i32, i32
  }
  func.func @transform_4(%arg0: i32) -> (i32, i32) {
    %c0_i32 = arith.constant 0 : i32
    %c0_i32_0 = arith.constant 0 : i32
    %c0_i32_1 = arith.constant 0 : i32
    return %c0_i32, %c0_i32_0 : i32, i32
  }
  func.func @transform_5(%arg0: i32) -> (i32, i32) {
    %c0_i32 = arith.constant 0 : i32
    %c0_i32_0 = arith.constant 0 : i32
    return %arg0, %c0_i32 : i32, i32
  }
}

</mosaic_0001>

<bundles_post_ra>
// kernel: tpu_custom_call.1
= control target key start
LH: loop header
LB: loop body
LE: loop exit
PB: predicated region body
PF: predicated region fallthrough
CT: control target
= control target key end

     0   :  { %10 = vsyncpa [#allocation3], 0  ;;  %s1247_s0 = inlined_call_operand.hbm [shape: f32[2,22], index: 0, kind: input, shape index: {}]   ;;  %s1248_s1 = inlined_call_operand.hbm [shape: f32[2,1152], index: 1, kind: input, shape index: {}]   ;;  %s1249_s2 = inlined_call_operand.hbm [shape: f32[22,128], index: 2, kind: input, shape index: {}]   ;;  %s1250_s3 = inlined_call_operand.hbm [shape: f32[1152,128], index: 3, kind: input, shape index: {}]   ;;  %s1251_s4 = inlined_call_operand.vmem [shape: f32[1,128], index: 4, kind: input, shape index: {}]   ;;  %s1252_s5 = inlined_call_operand.hbm [shape: f32[2,128], index: 5, kind: output, shape index: {}]  }
   0x1   :  { %11 = vsyncpa [#allocation6], 0 }
   0x2   :  { %12 = vsyncpa [#allocation9], 0 }
   0x3   :  { %13 = vsyncpa [#allocation4], 0 }
   0x4   :  { %18 = vsyncadd [#allocation3], 96  ;;  %s1146_s18 = smov [#allocation2]  }
   0x5   :  { %s19_s19 = sshll.u32 %s1146_s18, 4  ;;  %s20_s19 = int_to_ptr.vmem [resolvable:$true] %s19_s19 }
   0x6   :  { %s1046_s20 = scalar_lea.vmem %s20_s19, 32  ;;  %s1050_s21 = scalar_lea.vmem %s20_s19, 128 }
   0x7   :  { %p1047_p0 = scmp.ne.s32.totalorder %s20_s19, %s1046_s20  ;;  %p1051_p1 = scmp.lt.s32.totalorder %s20_s19, %s20_s19 }
   0x8   :  { %p1052_p2 = scmp.lt.s32.totalorder %s1050_s21, %s1046_s20 }
   0xa   :  { %p1053_p3 = por %p1052_p2, %p1051_p1 }
   0xc   :  { %p1054_p4 = pnand %p1053_p3, %p1047_p0 }
   0xe   :  { %1057 = shalt.err (!%p1054_p4)
}
   0xf   :  { %s1147_s22 = smov 32   ;;  %s1148_s23 = smov 2  }
  0x10   :  { %25 = dma.hbm_to_vmem [thread:$0]  %s1247_s0, 32, %s20_s19, [#allocation3], %s1147_s22, %s1147_s22, %s1148_s23  }
  0x11   :  { %30 = vsyncadd [#allocation6], 864  ;;  %s1149_s26 = smov [#allocation5]  }
  0x12   :  { %s31_s27 = sshll.u32 %s1149_s26, 4  ;;  %s32_s27 = int_to_ptr.vmem [resolvable:$true] %s31_s27 }
  0x13   :  { %s1066_s28 = scalar_lea.vmem %s32_s27, 288  ;;  %s1070_s29 = scalar_lea.vmem %s32_s27, 1152 }
  0x14   :  { %p1067_p5 = scmp.ne.s32.totalorder %s32_s27, %s1066_s28  ;;  %p1071_p6 = scmp.lt.s32.totalorder %s32_s27, %s32_s27 }
  0x15   :  { %p1072_p7 = scmp.lt.s32.totalorder %s1070_s29, %s1066_s28 }
  0x17   :  { %p1073_p8 = por %p1072_p7, %p1071_p6 }
  0x19   :  { %p1074_p9 = pnand %p1073_p8, %p1067_p5 }
  0x1b   :  { %1077 = shalt.err (!%p1074_p9)
}
  0x1c   :  { %s1150_s30 = smov 288   ;;  %s1151_s6 = smov 18  }
  0x1d   :  { %37 = dma.hbm_to_vmem [thread:$0]  %s1248_s1, 288, %s32_s27, [#allocation6], %s1150_s30, %s1150_s30, %s1151_s6  }
  0x1e   :  { %s1152_s9 = smov [#allocation7]  }
  0x1f   :  { %s43_s0 = sshll.u32 %s1152_s9, 4  ;;  %s44_s0 = int_to_ptr.vmem [resolvable:$true] %s43_s0 }
  0x20   :  { %s1086_s10 = scalar_lea.vmem %s44_s0, 384  ;;  %p1091_p11 = scmp.lt.s32.totalorder %s44_s0, %s44_s0 }
  0x21   :  { %p1087_p10 = scmp.ne.s32.totalorder %s44_s0, %s1086_s10  ;;  %p1092_p12 = scmp.lt.s32.totalorder %s1086_s10, %s1086_s10 }
  0x23   :  { %p1093_p13 = por %p1092_p12, %p1091_p11 }
  0x25   :  { %p1094_p0 = pnand %p1093_p13, %p1087_p10 }
  0x27   :  { %1097 = shalt.err (!%p1094_p0)
}
  0x28   :  { %s1153_s11 = smov 128   ;;  %s1154_s12 = smov 8  }
  0x29   :  { %49 = dma.hbm_to_vmem [thread:$0]  %s1249_s2, 384, %s44_s0, [#allocation6], %s1153_s11, %s1153_s11, %s1154_s12  }
  0x2a   :  { %s1155_s15 = smov [#allocation8]  }
  0x2b   :  { %s55_s16 = sshll.u32 %s1155_s15, 4  ;;  %s56_s16 = int_to_ptr.vmem [resolvable:$true] %s55_s16 }
  0x2c   :  { %s1106_s1 = scalar_lea.vmem %s56_s16, 18432  ;;  %p1111_p2 = scmp.lt.s32.totalorder %s56_s16, %s56_s16 }
  0x2d   :  { %p1107_p1 = scmp.ne.s32.totalorder %s56_s16, %s1106_s1  ;;  %p1112_p3 = scmp.lt.s32.totalorder %s1106_s1, %s1106_s1 }
  0x2f   :  { %p1113_p4 = por %p1112_p3, %p1111_p2 }
  0x31   :  { %p1114_p5 = pnand %p1113_p4, %p1107_p1 }
  0x33   :  { %1117 = shalt.err (!%p1114_p5)
}
  0x34   :  { %61 = dma.hbm_to_vmem [thread:$0]  %s1250_s3, 18432, %s56_s16, [#allocation9], %s1153_s11, %s1153_s11, %s1154_s12  }
  0x35   :  { %1138 = dma.done.wait [#allocation3], 128  }
  0x36   :  { %1139 = vsyncadd [#allocation3], 4294967168 }
  0x37   :  { %1140 = dma.done.wait [#allocation6], 1536  }
  0x38   :  { %1141 = vsyncadd [#allocation6], 4294965760 }
  0x39   :  { %1142 = dma.done.wait [#allocation9], 18432  }
  0x3a   :  { %1143 = vsyncadd [#allocation9], 4294948864  ;;  %v123_v0 = vld [vmem:[#allocation8 + $0xf8] sm:$0xff]  ;;  %v122_v4 = vld [vmem:[#allocation8 + $0xf0] sm:$0xff]  ;;  %v1156_v30 = vmov 1983009808   ;;  %v255_v32 = vlaneseq }
  0x3b   :  { %v155_v1 = vld [vmem:[#allocation8 + $0x1f8] sm:$0xff]  ;;  %805 = vmatprep.subr.mxu0 %v123_v0  ;;  %v154_v5 = vld [vmem:[#allocation8 + $0x1f0] sm:$0xff]  ;;  %v121_v8 = vld [vmem:[#allocation8 + $0xe8] sm:$0xff]  ;;  %v253_v31 = vunpack.c.l.s4 %v1156_v30  ;;  %vm700_vm0 = vcmask 1045504   ;;  %vm1158_vm1 = vmmov 0   ;;  %vm696_vm2 = vcmask 179200  }
  0x3c   :  { %v107_v2 = vld [vmem:[#allocation8 + $0x78] sm:$0xff]  ;;  %840 = vmatprep.subr.mxu1 %v155_v1  ;;  %v106_v6 = vld [vmem:[#allocation8 + $0x70] sm:$0xff]  ;;  %v153_v9 = vld [vmem:[#allocation8 + $0x1e8] sm:$0xff]  ;;  %v256_v42 = vshrl.u32 %v255_v32, 7 }
  0x3d   :  { %v139_v3 = vld [vmem:[#allocation8 + $0x178] sm:$0xff]  ;;  %806 = vmatpush3.msra.mxu0 %v107_v2  ;;  %v138_v7 = vld [vmem:[#allocation8 + $0x170] sm:$0xff]  ;;  %v105_v10 = vld [vmem:[#allocation8 + $0x68] sm:$0xff]  ;;  %v254_v41 = vunpack.c.0.s8 %v253_v31 }
  0x3e   :  { %841 = vmatpush3.msra.mxu1 %v139_v3  ;;  %807 = vmatprep.subr.mxu0 %v122_v4  ;;  %v137_v11 = vld [vmem:[#allocation8 + $0x168] sm:$0xff]  ;;  %v120_v12 = vld [vmem:[#allocation8 + $0xe0] sm:$0xff]  ;;  %v119_v16 = vld [vmem:[#allocation8 + $0xd8] sm:$0xff] }
  0x3f   :  { %842 = vmatprep.subr.mxu1 %v154_v5  ;;  %808 = vmatpush3.msra.mxu0 %v106_v6  ;;  %v152_v13 = vld [vmem:[#allocation8 + $0x1e0] sm:$0xff]  ;;  %v151_v17 = vld [vmem:[#allocation8 + $0x1d8] sm:$0xff]  ;;  %v118_v20 = vld [vmem:[#allocation8 + $0xd0] sm:$0xff]  ;;  %v1205_v55 = vsub.s32 %v254_v41, %v256_v42 }
  0x40   :  { %843 = vmatpush3.msra.mxu1 %v138_v7  ;;  %809 = vmatprep.subr.mxu0 %v121_v8  ;;  %v104_v14 = vld [vmem:[#allocation8 + $0x60] sm:$0xff]  ;;  %v103_v18 = vld [vmem:[#allocation8 + $0x58] sm:$0xff]  ;;  %v150_v21 = vld [vmem:[#allocation8 + $0x1d0] sm:$0xff] }
  0x41   :  { %844 = vmatprep.subr.mxu1 %v153_v9  ;;  %v136_v15 = vld [vmem:[#allocation8 + $0x160] sm:$0xff]  ;;  %810 = vmatpush3.msra.mxu0 %v105_v10  ;;  %v135_v19 = vld [vmem:[#allocation8 + $0x158] sm:$0xff]  ;;  %v102_v22 = vld [vmem:[#allocation8 + $0x50] sm:$0xff] }
  0x42   :  { %845 = vmatpush3.msra.mxu1 %v137_v11  ;;  %811 = vmatprep.subr.mxu0 %v120_v12  ;;  %v134_v23 = vld [vmem:[#allocation8 + $0x150] sm:$0xff]  ;;  %v117_v24 = vld [vmem:[#allocation8 + $0xc8] sm:$0xff]  ;;  %v116_v28 = vld [vmem:[#allocation8 + $0xc0] sm:$0xff] }
  0x43   :  { %846 = vmatprep.subr.mxu1 %v152_v13  ;;  %812 = vmatpush3.msra.mxu0 %v104_v14  ;;  %v149_v25 = vld [vmem:[#allocation8 + $0x1c8] sm:$0xff]  ;;  %v148_v29 = vld [vmem:[#allocation8 + $0x1c0] sm:$0xff]  ;;  %v115_v35 = vld [vmem:[#allocation8 + $0xb8] sm:$0xff] }
  0x44   :  { %847 = vmatpush3.msra.mxu1 %v136_v15  ;;  %813 = vmatprep.subr.mxu0 %v119_v16  ;;  %v101_v26 = vld [vmem:[#allocation8 + $0x48] sm:$0xff]  ;;  %v100_v33 = vld [vmem:[#allocation8 + $0x40] sm:$0xff]  ;;  %v147_v36 = vld [vmem:[#allocation8 + $0x1b8] sm:$0xff] }
  0x45   :  { %848 = vmatprep.subr.mxu1 %v151_v17  ;;  %814 = vmatpush3.msra.mxu0 %v103_v18  ;;  %v133_v27 = vld [vmem:[#allocation8 + $0x148] sm:$0xff]  ;;  %v132_v34 = vld [vmem:[#allocation8 + $0x140] sm:$0xff]  ;;  %v99_v37 = vld [vmem:[#allocation8 + $0x38] sm:$0xff] }
  0x46   :  { %849 = vmatpush3.msra.mxu1 %v135_v19  ;;  %815 = vmatprep.subr.mxu0 %v118_v20  ;;  %v131_v38 = vld [vmem:[#allocation8 + $0x138] sm:$0xff]  ;;  %v114_v39 = vld [vmem:[#allocation8 + $0xb0] sm:$0xff]  ;;  %v113_v45 = vld [vmem:[#allocation8 + $0xa8] sm:$0xff] }
  0x47   :  { %850 = vmatprep.subr.mxu1 %v150_v21  ;;  %816 = vmatpush3.msra.mxu0 %v102_v22  ;;  %v146_v40 = vld [vmem:[#allocation8 + $0x1b0] sm:$0xff]  ;;  %v145_v46 = vld [vmem:[#allocation8 + $0x1a8] sm:$0xff]  ;;  %v112_v49 = vld [vmem:[#allocation8 + $0xa0] sm:$0xff] }
  0x48   :  { %851 = vmatpush3.msra.mxu1 %v134_v23  ;;  %817 = vmatprep.subr.mxu0 %v117_v24  ;;  %v98_v43 = vld [vmem:[#allocation8 + $0x30] sm:$0xff]  ;;  %v97_v47 = vld [vmem:[#allocation8 + $0x28] sm:$0xff]  ;;  %v144_v50 = vld [vmem:[#allocation8 + $0x1a0] sm:$0xff] }
  0x49   :  { %852 = vmatprep.subr.mxu1 %v149_v25  ;;  %818 = vmatpush3.msra.mxu0 %v101_v26  ;;  %v130_v44 = vld [vmem:[#allocation8 + $0x130] sm:$0xff]  ;;  %v129_v48 = vld [vmem:[#allocation8 + $0x128] sm:$0xff]  ;;  %v96_v51 = vld [vmem:[#allocation8 + $0x20] sm:$0xff] }
  0x4a   :  { %853 = vmatpush3.msra.mxu1 %v133_v27  ;;  %819 = vmatprep.subr.mxu0 %v116_v28  ;;  %v128_v52 = vld [vmem:[#allocation8 + $0x120] sm:$0xff]  ;;  %v111_v53 = vld [vmem:[#allocation8 + $0x98] sm:$0xff]  ;;  %v110_v62 = vld [vmem:[#allocation8 + $0x90] sm:$0xff] }
  0x4b   :  { %854 = vmatprep.subr.mxu1 %v148_v29  ;;  %820 = vmatpush3.msra.mxu0 %v100_v33  ;;  %v143_v54 = vld [vmem:[#allocation8 + $0x198] sm:$0xff]  ;;  %v1024_v57 = vld [vmem:[#allocation5] ss:$18 sps:$4 sm:$0xff]   ;;  %v109_v6 = vld [vmem:[#allocation8 + $0x88] sm:$0xff] }
  0x4c   :  { %855 = vmatpush3.msra.mxu1 %v132_v34  ;;  %821 = vmatprep.subr.mxu0 %v115_v35  ;;  %v95_v56 = vld [vmem:[#allocation8 + $0x18] sm:$0xff]  ;;  %v142_v63 = vld [vmem:[#allocation8 + $0x190] sm:$0xff]  ;;  %v258_v0 = vrot.slane %v1024_v57, %v1205_v55  ;;  %v141_v7 = vld [vmem:[#allocation8 + $0x188] sm:$0xff] }
  0x4d   :  { %856 = vmatprep.subr.mxu1 %v147_v36  ;;  %822 = vmatpush3.msra.mxu0 %v99_v37  ;;  %v1026_v58 = vld [vmem:[#allocation5 + $0x24] ss:$18 sps:$4 sm:$0xff]   ;;  %v1029_v61 = vld [vmem:[#allocation5 + $0x28] ss:$18 sps:$4 sm:$0xff]  }
  0x4e   :  { %857 = vmatpush3.msra.mxu1 %v131_v38  ;;  %823 = vmatprep.subr.mxu0 %v114_v39  ;;  %v127_v59 = vld [vmem:[#allocation8 + $0x118] sm:$0xff]  ;;  %v272_v1 = vrot.slane %v1026_v58, %v1205_v55  ;;  %v94_v2 = vld [vmem:[#allocation8 + $0x10] sm:$0xff]  ;;  %v279_v5 = vrot.slane %v1029_v61, %v1205_v55  ;;  %v93_v8 = vld [vmem:[#allocation8 + $0x8] sm:$0xff] }
  0x4f   :  { %858 = vmatprep.subr.mxu1 %v146_v40  ;;  %824 = vmatpush3.msra.mxu0 %v98_v43  ;;  %v1028_v60 = vld [vmem:[#allocation5 + $0x4] ss:$18 sps:$4 sm:$0xff]   ;;  %v125_v9 = vld [vmem:[#allocation8 + $0x108] sm:$0xff] }
  0x50   :  { %859 = vmatpush3.msra.mxu1 %v130_v44  ;;  %825 = vmatprep.subr.mxu0 %v113_v45  ;;  %v126_v3 = vld [vmem:[#allocation8 + $0x110] sm:$0xff]  ;;  %v265_v4 = vrot.slane %v1028_v60, %v1205_v55  ;;  %v108_v10 = vld [vmem:[#allocation8 + $0x80] sm:$0xff]  ;;  %v281_v12 = vcombine.high %v258_v0, %v272_v1  ;;  %v280_v16 = vcombine.low %v258_v0, %v272_v1  ;;  %v187_v18 = vld [vmem:[#allocation8 + $0x2f8] sm:$0xff] }
  0x51   :  { %860 = vmatprep.subr.mxu1 %v145_v46  ;;  %826 = vmatpush3.msra.mxu0 %v97_v47  ;;  %v140_v11 = vld [vmem:[#allocation8 + $0x180] sm:$0xff]  ;;  %v219_v19 = vld [vmem:[#allocation8 + $0x3f8] sm:$0xff]  ;;  %v186_v22 = vld [vmem:[#allocation8 + $0x2f0] sm:$0xff] }
  0x52   :  { %861 = vmatpush3.msra.mxu1 %v129_v48  ;;  %827 = vmatprep.subr.mxu0 %v112_v49  ;;  %v92_v13 = vld [vmem:[#allocation8] sm:$0xff]  ;;  %v283_v14 = vcombine.high %v265_v4, %v279_v5  ;;  %v282_v17 = vcombine.low %v265_v4, %v279_v5  ;;  %v171_v20 = vld [vmem:[#allocation8 + $0x278] sm:$0xff]  ;;  %v218_v23 = vld [vmem:[#allocation8 + $0x3f0] sm:$0xff] }
  0x53   :  { %862 = vmatprep.subr.mxu1 %v144_v50  ;;  %828 = vmatpush3.msra.mxu0 %v96_v51  ;;  %v124_v15 = vld [vmem:[#allocation8 + $0x100] sm:$0xff]  ;;  %v203_v21 = vld [vmem:[#allocation8 + $0x378] sm:$0xff]  ;;  %v170_v24 = vld [vmem:[#allocation8 + $0x270] sm:$0xff] }
  0x54   :  { %863 = vmatpush3.msra.mxu1 %v128_v52  ;;  %829 = vmatprep.subr.mxu0 %v111_v53  ;;  %v202_v25 = vld [vmem:[#allocation8 + $0x370] sm:$0xff]  ;;  %v185_v26 = vld [vmem:[#allocation8 + $0x2e8] sm:$0xff]  ;;  %v184_v30 = vld [vmem:[#allocation8 + $0x2e0] sm:$0xff] }
  0x55   :  { %864 = vmatprep.subr.mxu1 %v143_v54  ;;  %830 = vmatpush3.msra.mxu0 %v95_v56  ;;  %v217_v27 = vld [vmem:[#allocation8 + $0x3e8] sm:$0xff]  ;;  %v216_v31 = vld [vmem:[#allocation8 + $0x3e0] sm:$0xff]  ;;  %v183_v34 = vld [vmem:[#allocation8 + $0x2d8] sm:$0xff] }
  0x56   :  { %865 = vmatpush3.msra.mxu1 %v127_v59  ;;  %831 = vmatprep.subr.mxu0 %v110_v62  ;;  %v169_v28 = vld [vmem:[#allocation8 + $0x268] sm:$0xff]  ;;  %v168_v32 = vld [vmem:[#allocation8 + $0x260] sm:$0xff]  ;;  %v215_v35 = vld [vmem:[#allocation8 + $0x3d8] sm:$0xff] }
  0x57   :  { %866 = vmatprep.subr.mxu1 %v142_v63  ;;  %832 = vmatpush3.msra.mxu0 %v94_v2  ;;  %v201_v29 = vld [vmem:[#allocation8 + $0x368] sm:$0xff]  ;;  %v200_v33 = vld [vmem:[#allocation8 + $0x360] sm:$0xff]  ;;  %v167_v36 = vld [vmem:[#allocation8 + $0x258] sm:$0xff] }
  0x58   :  { %867 = vmatpush3.msra.mxu1 %v126_v3  ;;  %833 = vmatprep.subr.mxu0 %v109_v6  ;;  %v199_v37 = vld [vmem:[#allocation8 + $0x358] sm:$0xff]  ;;  %v182_v38 = vld [vmem:[#allocation8 + $0x2d0] sm:$0xff]  ;;  %v181_v41 = vld [vmem:[#allocation8 + $0x2c8] sm:$0xff] }
  0x59   :  { %868 = vmatprep.subr.mxu1 %v141_v7  ;;  %834 = vmatpush3.msra.mxu0 %v93_v8  ;;  %v166_v39 = vld [vmem:[#allocation8 + $0x250] sm:$0xff]  ;;  %v165_v42 = vld [vmem:[#allocation8 + $0x248] sm:$0xff]  ;;  %v180_v46 = vld [vmem:[#allocation8 + $0x2c0] sm:$0xff] }
  0x5a   :  { %869 = vmatpush3.msra.mxu1 %v125_v9  ;;  %835 = vmatprep.subr.mxu0 %v108_v10  ;;  %v214_v40 = vld [vmem:[#allocation8 + $0x3d0] sm:$0xff]  ;;  %v213_v44 = vld [vmem:[#allocation8 + $0x3c8] sm:$0xff]  ;;  %v212_v47 = vld [vmem:[#allocation8 + $0x3c0] sm:$0xff] }
  0x5b   :  { %870 = vmatprep.subr.mxu1 %v140_v11  ;;  %836 = vmatpush3.msra.mxu0 %v92_v13  ;;  %v198_v43 = vld [vmem:[#allocation8 + $0x350] sm:$0xff]  ;;  %v197_v45 = vld [vmem:[#allocation8 + $0x348] sm:$0xff]  ;;  %v164_v48 = vld [vmem:[#allocation8 + $0x240] sm:$0xff] }
  0x5c   :  { %410 = vmatprep.mubr.f32.mxu0 %v281_v12  ;;  %871 = vmatpush3.msra.mxu1 %v124_v15  ;;  %v196_v49 = vld [vmem:[#allocation8 + $0x340] sm:$0xff]  ;;  %v179_v50 = vld [vmem:[#allocation8 + $0x2b8] sm:$0xff]  ;;  %v178_v54 = vld [vmem:[#allocation8 + $0x2b0] sm:$0xff] }
  0x5d   :  { %480 = vmatprep.mubr.f32.mxu1 %v283_v14  ;;  %411 = vmatmul.mubr.f32.vlgmr.msra.gmra.mxu0 %v280_v16  ;;  %v211_v51 = vld [vmem:[#allocation8 + $0x3b8] sm:$0xff]  ;;  %v162_v56 = vld [vmem:[#allocation8 + $0x230] sm:$0xff]  ;;  %v177_v58 = vld [vmem:[#allocation8 + $0x2a8] sm:$0xff] }
  0x5e   :  { %481 = vmatmul.mubr.f32.vlgmr.msra.gmra.mxu1 %v282_v17  ;;  %875 = vmatprep.subr.mxu0 %v187_v18  ;;  %v163_v52 = vld [vmem:[#allocation8 + $0x238] sm:$0xff]  ;;  %v210_v57 = vld [vmem:[#allocation8 + $0x3b0] sm:$0xff]  ;;  %v161_v59 = vld [vmem:[#allocation8 + $0x228] sm:$0xff] }
  0x5f   :  { %910 = vmatprep.subr.mxu1 %v219_v19  ;;  %876 = vmatpush3.msra.mxu0 %v171_v20  ;;  %v195_v53 = vld [vmem:[#allocation8 + $0x338] sm:$0xff]  ;;  %v194_v60 = vld [vmem:[#allocation8 + $0x330] sm:$0xff]  ;;  %v209_v61 = vld [vmem:[#allocation8 + $0x3a8] sm:$0xff] }
  0x60   :  { %911 = vmatpush3.msra.mxu1 %v203_v21  ;;  %877 = vmatprep.subr.mxu0 %v186_v22  ;;  %v1030_v62 = vld [vmem:[#allocation5 + $0x8] ss:$18 sps:$4 sm:$0xff]   ;;  %v1032_v63 = vld [vmem:[#allocation5 + $0x2c] ss:$18 sps:$4 sm:$0xff]   ;;  %v1035_v10 = vld [vmem:[#allocation5 + $0x30] ss:$18 sps:$4 sm:$0xff]  }
  0x61   :  { %912 = vmatprep.subr.mxu1 %v218_v23  ;;  %878 = vmatpush3.msra.mxu0 %v170_v24  ;;  %v176_v0 = vld [vmem:[#allocation8 + $0x2a0] sm:$0xff]  ;;  %v193_v2 = vld [vmem:[#allocation8 + $0x328] sm:$0xff]  ;;  %v175_v3 = vld [vmem:[#allocation8 + $0x298] sm:$0xff]  ;;  %v294_v7 = vrot.slane %v1030_v62, %v1205_v55  ;;  %v308_v8 = vrot.slane %v1032_v63, %v1205_v55  ;;  %v315_v21 = vrot.slane %v1035_v10, %v1205_v55 }
  0x62   :  { %913 = vmatpush3.msra.mxu1 %v202_v25  ;;  %879 = vmatprep.subr.mxu0 %v185_v26  ;;  %v160_v1 = vld [vmem:[#allocation8 + $0x220] sm:$0xff]  ;;  %v207_v6 = vld [vmem:[#allocation8 + $0x398] sm:$0xff]  ;;  %v174_v13 = vld [vmem:[#allocation8 + $0x290] sm:$0xff] }
  0x63   :  { %914 = vmatprep.subr.mxu1 %v217_v27  ;;  %880 = vmatpush3.msra.mxu0 %v169_v28  ;;  %v208_v4 = vld [vmem:[#allocation8 + $0x3a0] sm:$0xff]  ;;  %v159_v11 = vld [vmem:[#allocation8 + $0x218] sm:$0xff]  ;;  %v206_v14 = vld [vmem:[#allocation8 + $0x390] sm:$0xff]  ;;  %v317_v19 = vcombine.high %v294_v7, %v308_v8  ;;  %v316_v26 = vcombine.low %v294_v7, %v308_v8 }
  0x64   :  { %915 = vmatpush3.msra.mxu1 %v201_v29  ;;  %881 = vmatprep.subr.mxu0 %v184_v30  ;;  %v192_v5 = vld [vmem:[#allocation8 + $0x320] sm:$0xff]  ;;  %v191_v12 = vld [vmem:[#allocation8 + $0x318] sm:$0xff]  ;;  %v158_v15 = vld [vmem:[#allocation8 + $0x210] sm:$0xff] }
  0x65   :  { %916 = vmatprep.subr.mxu1 %v216_v31  ;;  %882 = vmatpush3.msra.mxu0 %v168_v32  ;;  %v1034_v9 = vld [vmem:[#allocation5 + $0xc] ss:$18 sps:$4 sm:$0xff]   ;;  %v190_v16 = vld [vmem:[#allocation8 + $0x310] sm:$0xff]  ;;  %v1157_v32 = vmov 0.0  }
  0x66   :  { %917 = vmatpush3.msra.mxu1 %v200_v33  ;;  %883 = vmatprep.subr.mxu0 %v183_v34  ;;  %v173_v17 = vld [vmem:[#allocation8 + $0x288] sm:$0xff]  ;;  %v301_v20 = vrot.slane %v1034_v9, %v1205_v55  ;;  %v172_v23 = vld [vmem:[#allocation8 + $0x280] sm:$0xff]  ;;  %v235_v31 = vld [vmem:[#allocation8 + $0x478] sm:$0xff] }
  0x67   :  { %918 = vmatprep.subr.mxu1 %v215_v35  ;;  %884 = vmatpush3.msra.mxu0 %v167_v36  ;;  %v205_v18 = vld [vmem:[#allocation8 + $0x388] sm:$0xff]  ;;  %v156_v25 = vld [vmem:[#allocation8 + $0x200] sm:$0xff]  ;;  %v234_v33 = vld [vmem:[#allocation8 + $0x470] sm:$0xff] }
  0x68   :  { %919 = vmatpush3.msra.mxu1 %v199_v37  ;;  %885 = vmatprep.subr.mxu0 %v182_v38  ;;  %v157_v22 = vld [vmem:[#allocation8 + $0x208] sm:$0xff]  ;;  %v204_v27 = vld [vmem:[#allocation8 + $0x380] sm:$0xff]  ;;  %v319_v28 = vcombine.high %v301_v20, %v315_v21  ;;  %v318_v30 = vcombine.low %v301_v20, %v315_v21  ;;  %v79_v34 = vld [vmem:[#allocation7 + $0x10] sm:$0x3f] }
  0x69   :  { %920 = vmatprep.subr.mxu1 %v214_v40  ;;  %886 = vmatpush3.msra.mxu0 %v166_v39  ;;  %v189_v24 = vld [vmem:[#allocation8 + $0x308] sm:$0xff]  ;;  %v188_v29 = vld [vmem:[#allocation8 + $0x300] sm:$0xff]  ;;  %v78_v36 = vld [vmem:[#allocation7 + $0x8] sm:$0xff] }
  0x6a   :  { %921 = vmatpush3.msra.mxu1 %v198_v43  ;;  %887 = vmatprep.subr.mxu0 %v181_v41  ;;  %v233_v35 = vld [vmem:[#allocation8 + $0x468] sm:$0xff]  ;;  %v232_v37 = vld [vmem:[#allocation8 + $0x460] sm:$0xff]  ;;  %v231_v39 = vld [vmem:[#allocation8 + $0x458] sm:$0xff] }
  0x6b   :  { %922 = vmatprep.subr.mxu1 %v213_v44  ;;  %888 = vmatpush3.msra.mxu0 %v165_v42  ;;  %v77_v38 = vld [vmem:[#allocation7] sm:$0xff]  ;;  %v76_v40 = vld [vmem:[#allocation2] sm:$0xff]  ;;  %v230_v41 = vld [vmem:[#allocation8 + $0x450] sm:$0xff] }
  0x6c   :  { %923 = vmatpush3.msra.mxu1 %v197_v45  ;;  %889 = vmatprep.subr.mxu0 %v180_v46  ;;  %v229_v42 = vld [vmem:[#allocation8 + $0x448] sm:$0xff]  ;;  %v228_v43 = vld [vmem:[#allocation8 + $0x440] sm:$0xff]  ;;  %v227_v44 = vld [vmem:[#allocation8 + $0x438] sm:$0xff] }
  0x6d   :  { %924 = vmatprep.subr.mxu1 %v212_v47  ;;  %890 = vmatpush3.msra.mxu0 %v164_v48  ;;  %v226_v45 = vld [vmem:[#allocation8 + $0x430] sm:$0xff]  ;;  %v225_v46 = vld [vmem:[#allocation8 + $0x428] sm:$0xff]  ;;  %v224_v47 = vld [vmem:[#allocation8 + $0x420] sm:$0xff] }
  0x6e   :  { %925 = vmatpush3.msra.mxu1 %v196_v49  ;;  %891 = vmatprep.subr.mxu0 %v179_v50  ;;  %v1036_v48 = vld [vmem:[#allocation5 + $0x10] ss:$18 sps:$4 sm:$0x33]   ;;  %v1037_v49 = vld [vmem:[#allocation5 + $0x34] ss:$18 sps:$4 sm:$0x33]  }
  0x6f   :  { %926 = vmatprep.subr.mxu1 %v211_v51  ;;  %892 = vmatpush3.msra.mxu0 %v163_v52  ;;  %v223_v50 = vld [vmem:[#allocation8 + $0x418] sm:$0xff]  ;;  %v222_v51 = vld [vmem:[#allocation8 + $0x410] sm:$0xff]  ;;  %v328_v52 = vrot.slane %v1036_v48, %v1205_v55 }
  0x70   :  { %927 = vmatpush3.msra.mxu1 %v195_v53  ;;  %893 = vmatprep.subr.mxu0 %v178_v54  ;;  %v335_v53 = vrot.slane %v1037_v49, %v1205_v55  ;;  %v221_v54 = vld [vmem:[#allocation8 + $0x408] sm:$0xff] }
  0x71   :  { %928 = vmatprep.subr.mxu1 %v210_v57  ;;  %894 = vmatpush3.msra.mxu0 %v162_v56  ;;  %v220_v56 = vld [vmem:[#allocation8 + $0x400] sm:$0xff] }
  0x72   :  { %929 = vmatpush3.msra.mxu1 %v194_v60  ;;  %895 = vmatprep.subr.mxu0 %v177_v58  ;;  %v336_v57 = vcombine.low %v328_v52, %v335_v53 }
  0x73   :  { %930 = vmatprep.subr.mxu1 %v209_v61  ;;  %896 = vmatpush3.msra.mxu0 %v161_v59 }
  0x74   :  { %931 = vmatpush3.msra.mxu1 %v193_v2  ;;  %897 = vmatprep.subr.mxu0 %v176_v0 }
  0x75   :  { %932 = vmatprep.subr.mxu1 %v208_v4  ;;  %898 = vmatpush3.msra.mxu0 %v160_v1 }
  0x76   :  { %933 = vmatpush3.msra.mxu1 %v192_v5  ;;  %899 = vmatprep.subr.mxu0 %v175_v3 }
  0x77   :  { %934 = vmatprep.subr.mxu1 %v207_v6  ;;  %900 = vmatpush3.msra.mxu0 %v159_v11 }
  0x78   :  { %935 = vmatpush3.msra.mxu1 %v191_v12  ;;  %901 = vmatprep.subr.mxu0 %v174_v13  ;;  %v804_v12 = vld [vmem:[%s1251_s4] ss:$0 sm:$0xff] }
  0x79   :  { %936 = vmatprep.subr.mxu1 %v206_v14  ;;  %902 = vmatpush3.msra.mxu0 %v158_v15 }
  0x7a   :  { %937 = vmatpush3.msra.mxu1 %v190_v16  ;;  %903 = vmatprep.subr.mxu0 %v173_v17 }
  0x7b   :  { %938 = vmatprep.subr.mxu1 %v205_v18  ;;  %904 = vmatpush3.msra.mxu0 %v157_v22 }
  0x7c   :  { %550 = vmatprep.mubr.f32.mxu0 %v317_v19  ;;  %905 = vmatprep.subr.mxu0 %v172_v23 }
  0x7d   :  { %939 = vmatpush3.msra.mxu1 %v189_v24  ;;  %906 = vmatpush3.msra.mxu0 %v156_v25 }
  0x7e   :  { %940 = vmatprep.subr.mxu1 %v204_v27  ;;  %551 = vmatmul.mubr.f32.vlgmr.msra.gmra.mxu0 %v316_v26 }
  0x7f   :  { %966 = vmatprep.subr.mxu0 %v1157_v32  ;;  %941 = vmatpush3.msra.mxu1 %v188_v29 }
  0x80   :  { %620 = vmatprep.mubr.f32.mxu1 %v319_v28  ;;  %967 = vmatpush3.msra.mxu0 %v235_v31 }
  0x81   :  { %621 = vmatmul.mubr.f32.vlgmr.msra.gmra.mxu1 %v318_v30  ;;  %968 = vmatprep.subr.mxu0 %v1157_v32 }
  0x82   :  { %1001 = vmatprep.subr.mxu1 %v1157_v32  ;;  %969 = vmatpush3.msra.mxu0 %v234_v33 }
  0x83   :  { %1002 = vmatpush3.msk.msra.mxu1 %vm700_vm0, %v79_v34  ;;  %970 = vmatprep.subr.mxu0 %v1157_v32 }
  0x84   :  { %1003 = vmatprep.subr.mxu1 %v1157_v32  ;;  %971 = vmatpush3.msra.mxu0 %v233_v35 }
  0x85   :  { %1004 = vmatpush3.msra.mxu1 %v78_v36  ;;  %972 = vmatprep.subr.mxu0 %v1157_v32 }
  0x86   :  { %1005 = vmatprep.subr.mxu1 %v1157_v32  ;;  %973 = vmatpush3.msra.mxu0 %v232_v37 }
  0x87   :  { %998 = vmatprep.mubr.msk.f32.mxu0 %vm1158_vm1, %v1157_v32  ;;  %974 = vmatprep.subr.mxu0 %v1157_v32 }
  0x88   :  { %1006 = vmatpush3.msra.mxu1 %v77_v38  ;;  %975 = vmatpush3.msra.mxu0 %v231_v39 }
  0x89   :  { %1007 = vmatprep.mubr.msk.f32.mxu1 %vm1158_vm1, %v1157_v32  ;;  %976 = vmatprep.subr.mxu0 %v1157_v32 }
  0x8a   :  { %1008 = vmatmul.mubr.msk.f32.vlgmr.msra.gmra.mxu1 %vm696_vm2, %v76_v40  ;;  %977 = vmatpush3.msra.mxu0 %v230_v41 }
  0x8b   :  { %978 = vmatprep.subr.mxu0 %v1157_v32 }
  0x8c   :  { %979 = vmatpush3.msra.mxu0 %v229_v42 }
  0x8d   :  { %980 = vmatprep.subr.mxu0 %v1157_v32 }
  0x8e   :  { %981 = vmatpush3.msra.mxu0 %v228_v43 }
  0x8f   :  { %982 = vmatprep.subr.mxu0 %v1157_v32 }
  0x90   :  { %983 = vmatpush3.msra.mxu0 %v227_v44 }
  0x91   :  { %984 = vmatprep.subr.mxu0 %v1157_v32 }
  0x92   :  { %985 = vmatpush3.msra.mxu0 %v226_v45 }
  0x93   :  { %986 = vmatprep.subr.mxu0 %v1157_v32 }
  0x94   :  { %987 = vmatpush3.msra.mxu0 %v225_v46 }
  0x95   :  { %988 = vmatprep.subr.mxu0 %v1157_v32 }
  0x96   :  { %989 = vmatpush3.msra.mxu0 %v224_v47 }
  0x97   :  { %990 = vmatprep.subr.mxu0 %v1157_v32 }
  0x98   :  { %991 = vmatpush3.msra.mxu0 %v223_v50 }
  0x99   :  { %992 = vmatprep.subr.mxu0 %v1157_v32 }
  0x9a   :  { %993 = vmatpush3.msra.mxu0 %v222_v51 }
  0x9b   :  { %994 = vmatprep.subr.mxu0 %v1157_v32 }
  0x9c   :  { %995 = vmatpush3.msra.mxu0 %v221_v54 }
  0x9d   :  { %996 = vmatprep.subr.mxu0 %v1157_v32 }
  0x9e   :  { %997 = vmatpush3.msra.mxu0 %v220_v56 }
  0x9f   :  { %999 = vmatmul.mubr.f32.vlgmr.msra.gmra.mxu0 %v336_v57 }
 0x11d   :  { %v837_v62 = vpop.f32.mrf.mxu0 }
 0x11e   :  { %v872_v58 = vpop.f32.mrf.mxu1 }
 0x11f   :  { %v838_v0 = vpop.f32.mrf.mxu0 }
 0x120   :  { %v873_v59 = vpop.f32.mrf.mxu1  ;;  %v839_v3 = vadd.f32 %v838_v0, %v837_v62 }
 0x121   :  { %v874_v4 = vadd.f32 %v873_v59, %v872_v58 }
 0x123   :  { %v483_v6 = vadd.f32 %v874_v4, %v839_v3 }
 0x13e   :  { %v907_v1 = vpop.f32.mrf.mxu0 }
 0x140   :  { %v908_v2 = vpop.f32.mrf.mxu0 }
 0x141   :  { %v942_v60 = vpop.f32.mrf.mxu1  ;;  %v909_v5 = vadd.f32 %v908_v2, %v907_v1 }
 0x143   :  { %v943_v61 = vpop.f32.mrf.mxu1  ;;  %v553_v7 = vadd.f32 %v909_v5, %v483_v6 }
 0x144   :  { %v944_v8 = vadd.f32 %v943_v61, %v942_v60 }
 0x146   :  { %v623_v9 = vadd.f32 %v944_v8, %v553_v7 }
 0x14a   :  { %v770_v55 = vpop.f32.mrf.mxu1 }
 0x14c   :  { %v1009_v63 = vpop.f32.mrf.mxu1 }
 0x15f   :  { %v692_v10 = vpop.f32.mrf.mxu0 }
 0x160   :  { %v693_v11 = vadd.f32 %v692_v10, %v623_v9 }
 0x161   :  { %v1000_v13 = vpop.f32.mrf.mxu0 }
 0x162   :  { %v771_v14 = vadd.f32 %v770_v55, %v693_v11 }
 0x164   :  { %v781_v15 = vadd.f32 %v804_v12, %v771_v14 }
 0x166   :  { %782 = vst [vmem:[#allocation10] sm:$0xff] %v781_v15 }
 0x167   :  { %787 = vsyncadd [#allocation4], 96  ;;  %s1159_s19 = smov [#allocation10]  }
 0x168   :  { %s788_s20 = sshll.u32 %s1159_s19, 4  ;;  %s789_s20 = int_to_ptr.vmem [resolvable:$true] %s788_s20 }
 0x169   :  { %s1118_s21 = scalar_lea.vmem %s789_s20, 32  ;;  %s1122_s24 = scalar_lea.vmem %s789_s20, 128 }
 0x16a   :  { %p1119_p6 = scmp.ne.s32.totalorder %s789_s20, %s1118_s21  ;;  %p1123_p7 = scmp.lt.s32.totalorder %s789_s20, %s789_s20 }
 0x16b   :  { %p1124_p8 = scmp.lt.s32.totalorder %s1122_s24, %s1118_s21 }
 0x16d   :  { %p1125_p9 = por %p1124_p8, %p1123_p7 }
 0x16f   :  { %p1126_p10 = pnand %p1125_p9, %p1119_p6 }
 0x171   :  { %1129 = shalt.err (!%p1126_p10)
}
 0x172   :  { %794 = dma.vmem_to_hbm [thread:$0]  %s789_s20, 32, %s1252_s5, [#allocation4], %s1147_s22, %s1147_s22, %s1148_s23  }
 0x173   :  { %1144 = dma.done.wait [#allocation4], 128  }
 0x174   :  { %1145 = vsyncadd [#allocation4], 4294967168 }
 0x175   :  { %798 = vsyncpa [#allocation3], 1 }
 0x176   :  { %799 = vsyncpa [#allocation6], 1 }
 0x177   :  { %800 = vsyncpa [#allocation9], 1 }
 0x178   :  { %801 = vsyncpa [#allocation4], 1 }

</bundles_post_ra>
